<compile_context>
chip_gen: v7x
topology: tpu7x:2x2x1
jax: 0.10.0
libtpu: 0.0.40
codegen_flags: <defaults>
</compile_context>

<pallas_src>
import functools

import jax
import jax.numpy as jnp
from jax.experimental import pallas as pl
from jax.experimental.pallas import tpu as pltpu


def _round_up(n, m):
    return ((n + m - 1) // m) * m


def _leaky_relu(x, negative_slope=0.01):
    # F.leaky_relu default negative_slope = 0.01
    return jnp.where(x > 0, x, negative_slope * x)


def discrete_il_kernel(x_ref,
                       w1_ref, b1_ref,
                       w2_ref, b2_ref,
                       w4_ref, b4_ref,
                       w3_ref, b3_ref,
                       o_ref,
                       *, n_actions):
    # x arrives already in bf16 (cast in the wrapper).  Matmuls use bf16
    # operands with f32 accumulation; elementwise math stays f32 (v5e has no
    # bf16 VPU/EUP); the *stored* inter-layer activation is bf16.
    x = x_ref[...]

    # fc1 + leaky_relu   (dropout == identity in eval mode)
    h = jnp.dot(x, w1_ref[...], preferred_element_type=jnp.float32) + b1_ref[...]
    h = _leaky_relu(h).astype(jnp.bfloat16)

    # fc2 + leaky_relu
    h = jnp.dot(h, w2_ref[...], preferred_element_type=jnp.float32) + b2_ref[...]
    h = _leaky_relu(h).astype(jnp.bfloat16)

    # fc4 + leaky_relu
    h = jnp.dot(h, w4_ref[...], preferred_element_type=jnp.float32) + b4_ref[...]
    h = _leaky_relu(h).astype(jnp.bfloat16)

    # fc3 + softmax(dim=1) over the real (unpadded) action lanes only.
    logits = jnp.dot(h, w3_ref[...], preferred_element_type=jnp.float32) + b3_ref[...]
    col = jax.lax.broadcasted_iota(jnp.int32, logits.shape, 1)
    logits = jnp.where(col < n_actions, logits, -jnp.inf)

    m = jnp.max(logits, axis=1, keepdims=True)
    e = jnp.exp(logits - m)                      # padded lanes -> exactly 0
    denom = jnp.sum(e, axis=1, keepdims=True)
    # EUP reciprocal + one Newton refinement (keeps ~f32 accuracy, frees VALU).
    inv = pl.reciprocal(denom, approx=True)
    inv = inv * (2.0 - denom * inv)
    o_ref[...] = (e * inv).astype(o_ref.dtype)


def init_params(key, input_shape, n_actions):
    """Deterministic init mimicking PyTorch Linear default
    (U(-1/sqrt(fan_in), 1/sqrt(fan_in))). Weights stored as (in, out), f32."""
    dims = [(input_shape, 400), (400, 200), (200, 50), (50, n_actions)]
    params = []
    for (fan_in, fan_out) in dims:
        key, kw, kb = jax.random.split(key, 3)
        bound = 1.0 / jnp.sqrt(fan_in)
        w = jax.random.uniform(kw, (fan_in, fan_out), jnp.float32, -bound, bound)
        b = jax.random.uniform(kb, (1, fan_out), jnp.float32, -bound, bound)
        params += [w, b]
    return tuple(params)


def _pad2(a, rows, cols):
    r, c = a.shape
    return jnp.pad(a, ((0, rows - r), (0, cols - c)))


def prepare_params(params):
    """Zero-pad hidden/output feature dims to multiples of 128 and cast
    weights to bf16 (biases stay f32).  The fc1 *input* dim (D_in) is
    deliberately NOT padded, so x keeps its true last dim and its DMA is not
    inflated.  Zero-padded columns stay zero through bias + leaky_relu, so
    results are unchanged."""
    out = []
    for idx in range(0, len(params), 2):
        w, b = params[idx], params[idx + 1]
        in_p = w.shape[0] if idx == 0 else _round_up(w.shape[0], 128)
        out_p = _round_up(w.shape[1], 128)
        out.append(_pad2(w, in_p, out_p).astype(jnp.bfloat16))
        out.append(_pad2(b, 1, out_p).astype(jnp.float32))
    return tuple(out)


def _pick_batch_tile(B):
    """Whole batch in one step when small; for B > 128 an even number of
    larger steps (<=1024 rows) so the 'parallel' grid axis can shard across
    v7x's two TensorCores while amortizing per-step overhead.  16-row
    alignment keeps bf16 sublane packing clean."""
    if B <= 128:
        return _round_up(B, 16)
    n_steps = max(2, pl.cdiv(B, 1024))
    if n_steps % 2:
        n_steps += 1
    return _round_up(pl.cdiv(B, n_steps), 16)


def discrete_il_forward(x, padded_params, n_actions, *, batch_tile=None):
    """Run the fused MLP kernel. x: [B, D_in]. Returns [B, n_actions] f32."""
    B, D_in = x.shape
    w1, b1, w2, b2, w4, b4, w3, b3 = padded_params
    assert w1.shape[0] == D_in, "fc1 weight input dim must match x feature dim"
    a_pad = w3.shape[1]

    if batch_tile is None:
        batch_tile = _pick_batch_tile(B)
    batch_tile = _round_up(batch_tile, 16)

    b_pad = _round_up(B, batch_tile)
    # Feed x as bf16 (the kernel truncated it anyway) -> half the input DMA.
    xp = x.astype(jnp.bfloat16)
    if b_pad != B:
        xp = jnp.pad(xp, ((0, b_pad - B), (0, 0)))

    grid = (b_pad // batch_tile,)
    kernel = functools.partial(discrete_il_kernel, n_actions=n_actions)

    # Weights/biases are small (~0.4 MiB bf16 total) and grid-invariant: each
    # is one full block whose block index never changes across the grid.
    # (Single-buffering them via pipeline_mode=pl.Buffered(1) would save
    #  <1 MiB of VMEM; intentionally skipped to keep lowering conservative.)
    def full_spec(arr):
        return pl.BlockSpec(arr.shape, lambda i: (0,) * arr.ndim)

    out = pl.pallas_call(
        kernel,
        out_shape=jax.ShapeDtypeStruct((b_pad, a_pad), jnp.bfloat16),
        grid_spec=pltpu.PrefetchScalarGridSpec(
            num_scalar_prefetch=0,
            grid=grid,
            in_specs=[
                pl.BlockSpec((batch_tile, D_in), lambda i: (i, 0)),   # x tile
                full_spec(w1), full_spec(b1),
                full_spec(w2), full_spec(b2),
                full_spec(w4), full_spec(b4),
                full_spec(w3), full_spec(b3),
            ],
            out_specs=pl.BlockSpec((batch_tile, a_pad), lambda i: (i, 0)),
        ),
        compiler_params=pltpu.CompilerParams(
            dimension_semantics=("parallel",),
            # Worst case (1024-row tile, bf16 intermediates) needs well under
            # 32 MiB -> safe on v5e/v6e (128 MiB) and v7x (64 MiB/TC).
            vmem_limit_bytes=32 * 1024 * 1024,
        ),
    )(xp, w1, b1, w2, b2, w4, b4, w3, b3)

    # Lane-dense padded (b_pad, 128) bf16 block; slice real actions + upcast.
    return out[:B, :n_actions].astype(jnp.float32)


def reference_forward(x, params, matmul_dtype=jnp.float32):
    """Plain-JAX reference (eval-mode dropout = identity)."""
    w1, b1, w2, b2, w4, b4, w3, b3 = params

    def lin(h, w, b):
        return jnp.dot(h.astype(matmul_dtype), w.astype(matmul_dtype),
                       preferred_element_type=jnp.float32) + b

    h = _leaky_relu(lin(x, w1, b1))
    h = _leaky_relu(lin(h, w2, b2))
    h = _leaky_relu(lin(h, w4, b4))
    logits = lin(h, w3, b3)
    return jax.nn.softmax(logits, axis=1)


if __name__ == "__main__":
    key = jax.random.PRNGKey(0)
    B, D_in, n_actions = 16, 32, 10

    kx, kp = jax.random.split(key)
    x = jax.random.normal(kx, (B, D_in), jnp.float32)
    params = init_params(kp, D_in, n_actions)
    padded_params = prepare_params(params)

    out = discrete_il_forward(x, padded_params, n_actions)
    out = jax.block_until_ready(out)

    # Reference with matching precision (bf16 matmul operands, f32 accumulate).
    ref_match = reference_forward(x, params, matmul_dtype=jnp.bfloat16)
    # Full-f32 reference (original PyTorch-semantics check, looser tolerance
    # because the kernel uses bf16 matmul operands and a bf16 output store).
    ref_f32 = reference_forward(x, params, matmul_dtype=jnp.float32)

    assert out.shape == (B, n_actions)
    # bf16 output store: per-row sum error is bounded by ~2^-9.
    assert jnp.allclose(jnp.sum(out, axis=1), 1.0, atol=1e-2)
    assert jnp.allclose(out, ref_match, atol=5e-3, rtol=5e-3)
    assert jnp.allclose(out, ref_f32, atol=5e-2, rtol=5e-2)

    print("KERNEL_OK")
</pallas_src>

<mosaic_0001>
module attributes {stable_mosaic.version = 11 : i64} {
  func.func @discrete_il_kernel(%arg0: i32, %arg1: memref<16x32xbf16, #tpu.memory_space<vmem>>, %arg2: memref<32x512xbf16, #tpu.memory_space<vmem>>, %arg3: memref<1x512xf32, #tpu.memory_space<vmem>>, %arg4: memref<512x256xbf16, #tpu.memory_space<vmem>>, %arg5: memref<1x256xf32, #tpu.memory_space<vmem>>, %arg6: memref<256x128xbf16, #tpu.memory_space<vmem>>, %arg7: memref<1x128xf32, #tpu.memory_space<vmem>>, %arg8: memref<128x128xbf16, #tpu.memory_space<vmem>>, %arg9: memref<1x128xf32, #tpu.memory_space<vmem>>, %arg10: memref<16x128xbf16, #tpu.memory_space<vmem>>) attributes {dimension_semantics = [#tpu.dimension_semantics<parallel>], iteration_bounds = array<i64: 1>, scalar_prefetch = 0 : i64, scratch_operands = 0 : i64, tpu.core_type = #tpu.core_type<tc>, window_params = [{transform_indices = @transform_0, window_bounds = array<i64: 16, 32>}, {pipeline_mode = #tpu.pipeline_mode<synchronous>, transform_indices = @transform_1, window_bounds = array<i64: 32, 512>}, {pipeline_mode = #tpu.pipeline_mode<synchronous>, transform_indices = @transform_2, window_bounds = array<i64: 1, 512>}, {pipeline_mode = #tpu.pipeline_mode<synchronous>, transform_indices = @transform_3, window_bounds = array<i64: 512, 256>}, {pipeline_mode = #tpu.pipeline_mode<synchronous>, transform_indices = @transform_4, window_bounds = array<i64: 1, 256>}, {pipeline_mode = #tpu.pipeline_mode<synchronous>, transform_indices = @transform_5, window_bounds = array<i64: 256, 128>}, {pipeline_mode = #tpu.pipeline_mode<synchronous>, transform_indices = @transform_6, window_bounds = array<i64: 1, 128>}, {pipeline_mode = #tpu.pipeline_mode<synchronous>, transform_indices = @transform_7, window_bounds = array<i64: 128, 128>}, {pipeline_mode = #tpu.pipeline_mode<synchronous>, transform_indices = @transform_8, window_bounds = array<i64: 1, 128>}, {transform_indices = @transform_9, window_bounds = array<i64: 16, 128>}]} {
    %c0 = arith.constant 0 : index
    %c0_0 = arith.constant 0 : index
    %0 = vector.load %arg1[%c0, %c0_0] : memref<16x32xbf16, #tpu.memory_space<vmem>>, vector<16x32xbf16>
    %c0_1 = arith.constant 0 : index
    %c0_2 = arith.constant 0 : index
    %1 = vector.load %arg2[%c0_1, %c0_2] : memref<32x512xbf16, #tpu.memory_space<vmem>>, vector<32x512xbf16>
    %cst = arith.constant dense<0.000000e+00> : vector<16x512xf32>
    %2 = tpu.matmul %0, %1, %cst {dimension_numbers = #tpu.dot_dimension_numbers<[1], [0], [0], [1], [0, 0, 1, 1], [], []>} : vector<16x32xbf16>, vector<32x512xbf16>, vector<16x512xf32> -> vector<16x512xf32>
    %c0_3 = arith.constant 0 : index
    %c0_4 = arith.constant 0 : index
    %3 = vector.load %arg3[%c0_3, %c0_4] : memref<1x512xf32, #tpu.memory_space<vmem>>, vector<1x512xf32>
    %4 = vector.broadcast %3 : vector<1x512xf32> to vector<16x512xf32>
    %5 = arith.addf %2, %4 : vector<16x512xf32>
    %cst_5 = arith.constant 0.000000e+00 : f32
    %6 = vector.broadcast %cst_5 : f32 to vector<16x512xf32>
    %7 = arith.cmpf ogt, %5, %6 : vector<16x512xf32>
    %cst_6 = arith.constant 0.00999999977 : f32
    %8 = vector.broadcast %cst_6 : f32 to vector<16x512xf32>
    %9 = arith.mulf %8, %5 : vector<16x512xf32>
    %10 = arith.select %7, %5, %9 : vector<16x512xi1>, vector<16x512xf32>
    %11 = arith.truncf %10 : vector<16x512xf32> to vector<16x512xbf16>
    %c0_7 = arith.constant 0 : index
    %c0_8 = arith.constant 0 : index
    %12 = vector.load %arg4[%c0_7, %c0_8] : memref<512x256xbf16, #tpu.memory_space<vmem>>, vector<512x256xbf16>
    %cst_9 = arith.constant dense<0.000000e+00> : vector<16x256xf32>
    %13 = tpu.matmul %11, %12, %cst_9 {dimension_numbers = #tpu.dot_dimension_numbers<[1], [0], [0], [1], [0, 0, 1, 1], [], []>} : vector<16x512xbf16>, vector<512x256xbf16>, vector<16x256xf32> -> vector<16x256xf32>
    %c0_10 = arith.constant 0 : index
    %c0_11 = arith.constant 0 : index
    %14 = vector.load %arg5[%c0_10, %c0_11] : memref<1x256xf32, #tpu.memory_space<vmem>>, vector<1x256xf32>
    %15 = vector.broadcast %14 : vector<1x256xf32> to vector<16x256xf32>
    %16 = arith.addf %13, %15 : vector<16x256xf32>
    %cst_12 = arith.constant 0.000000e+00 : f32
    %17 = vector.broadcast %cst_12 : f32 to vector<16x256xf32>
    %18 = arith.cmpf ogt, %16, %17 : vector<16x256xf32>
    %cst_13 = arith.constant 0.00999999977 : f32
    %19 = vector.broadcast %cst_13 : f32 to vector<16x256xf32>
    %20 = arith.mulf %19, %16 : vector<16x256xf32>
    %21 = arith.select %18, %16, %20 : vector<16x256xi1>, vector<16x256xf32>
    %22 = arith.truncf %21 : vector<16x256xf32> to vector<16x256xbf16>
    %c0_14 = arith.constant 0 : index
    %c0_15 = arith.constant 0 : index
    %23 = vector.load %arg6[%c0_14, %c0_15] : memref<256x128xbf16, #tpu.memory_space<vmem>>, vector<256x128xbf16>
    %cst_16 = arith.constant dense<0.000000e+00> : vector<16x128xf32>
    %24 = tpu.matmul %22, %23, %cst_16 {dimension_numbers = #tpu.dot_dimension_numbers<[1], [0], [0], [1], [0, 0, 1, 1], [], []>} : vector<16x256xbf16>, vector<256x128xbf16>, vector<16x128xf32> -> vector<16x128xf32>
    %c0_17 = arith.constant 0 : index
    %c0_18 = arith.constant 0 : index
    %25 = vector.load %arg7[%c0_17, %c0_18] : memref<1x128xf32, #tpu.memory_space<vmem>>, vector<1x128xf32>
    %26 = vector.broadcast %25 : vector<1x128xf32> to vector<16x128xf32>
    %27 = arith.addf %24, %26 : vector<16x128xf32>
    %cst_19 = arith.constant 0.000000e+00 : f32
    %28 = vector.broadcast %cst_19 : f32 to vector<16x128xf32>
    %29 = arith.cmpf ogt, %27, %28 : vector<16x128xf32>
    %cst_20 = arith.constant 0.00999999977 : f32
    %30 = vector.broadcast %cst_20 : f32 to vector<16x128xf32>
    %31 = arith.mulf %30, %27 : vector<16x128xf32>
    %32 = arith.select %29, %27, %31 : vector<16x128xi1>, vector<16x128xf32>
    %33 = arith.truncf %32 : vector<16x128xf32> to vector<16x128xbf16>
    %c0_21 = arith.constant 0 : index
    %c0_22 = arith.constant 0 : index
    %34 = vector.load %arg8[%c0_21, %c0_22] : memref<128x128xbf16, #tpu.memory_space<vmem>>, vector<128x128xbf16>
    %cst_23 = arith.constant dense<0.000000e+00> : vector<16x128xf32>
    %35 = tpu.matmul %33, %34, %cst_23 {dimension_numbers = #tpu.dot_dimension_numbers<[1], [0], [0], [1], [0, 0, 1, 1], [], []>} : vector<16x128xbf16>, vector<128x128xbf16>, vector<16x128xf32> -> vector<16x128xf32>
    %c0_24 = arith.constant 0 : index
    %c0_25 = arith.constant 0 : index
    %36 = vector.load %arg9[%c0_24, %c0_25] : memref<1x128xf32, #tpu.memory_space<vmem>>, vector<1x128xf32>
    %37 = vector.broadcast %36 : vector<1x128xf32> to vector<16x128xf32>
    %38 = arith.addf %35, %37 : vector<16x128xf32>
    %39 = tpu.iota {dimensions = array<i32: 1>} : vector<16x128xi32>
    %c10_i32 = arith.constant 10 : i32
    %40 = vector.broadcast %c10_i32 : i32 to vector<16x128xi32>
    %41 = arith.cmpi slt, %39, %40 : vector<16x128xi32>
    %cst_26 = arith.constant 0xFF800000 : f32
    %42 = vector.broadcast %cst_26 : f32 to vector<16x128xf32>
    %43 = arith.select %41, %38, %42 : vector<16x128xi1>, vector<16x128xf32>
    %cst_27 = arith.constant dense<0xFF800000> : vector<16xf32>
    %44 = vector.multi_reduction <maximumf>, %43, %cst_27 [1] : vector<16x128xf32> to vector<16xf32>
    %45 = vector.shape_cast %44 : vector<16xf32> to vector<16x1xf32>
    %46 = vector.broadcast %45 : vector<16x1xf32> to vector<16x128xf32>
    %47 = arith.subf %43, %46 : vector<16x128xf32>
    %48 = math.exp %47 : vector<16x128xf32>
    %cst_28 = arith.constant dense<0.000000e+00> : vector<16xf32>
    %49 = vector.multi_reduction <add>, %48, %cst_28 [1] : vector<16x128xf32> to vector<16xf32>
    %50 = vector.shape_cast %49 : vector<16xf32> to vector<16x1xf32>
    %51 = tpu.reciprocal %50 {approx = true} : vector<16x1xf32> -> vector<16x1xf32>
    %52 = arith.mulf %50, %51 : vector<16x1xf32>
    %cst_29 = arith.constant 2.000000e+00 : f32
    %53 = vector.broadcast %cst_29 : f32 to vector<16x1xf32>
    %54 = arith.subf %53, %52 : vector<16x1xf32>
    %55 = arith.mulf %51, %54 : vector<16x1xf32>
    %56 = vector.broadcast %55 : vector<16x1xf32> to vector<16x128xf32>
    %57 = arith.mulf %48, %56 : vector<16x128xf32>
    %58 = arith.truncf %57 : vector<16x128xf32> to vector<16x128xbf16>
    %c0_30 = arith.constant 0 : index
    %c0_31 = arith.constant 0 : index
    %59 = vector.load %arg10[%c0_30, %c0_31] : memref<16x128xbf16, #tpu.memory_space<vmem>>, vector<16x128xbf16>
    tpu.vector_store %arg10[%c0_30, %c0_31], %58 {strides = array<i32>} : memref<16x128xbf16, #tpu.memory_space<vmem>>, vector<16x128xbf16>,
    return
  }
  func.func @transform_0(%arg0: i32) -> (i32, i32) {
    %c0_i32 = arith.constant 0 : i32
    %c0_i32_0 = arith.constant 0 : i32
    return %arg0, %c0_i32 : i32, i32
  }
  func.func @transform_1(%arg0: i32) -> (i32, i32) {
    %c0_i32 = arith.constant 0 : i32
    %c0_i32_0 = arith.constant 0 : i32
    %c0_i32_1 = arith.constant 0 : i32
    return %c0_i32, %c0_i32_0 : i32, i32
  }
  func.func @transform_2(%arg0: i32) -> (i32, i32) {
    %c0_i32 = arith.constant 0 : i32
    %c0_i32_0 = arith.constant 0 : i32
    %c0_i32_1 = arith.constant 0 : i32
    return %c0_i32, %c0_i32_0 : i32, i32
  }
  func.func @transform_3(%arg0: i32) -> (i32, i32) {
    %c0_i32 = arith.constant 0 : i32
    %c0_i32_0 = arith.constant 0 : i32
    %c0_i32_1 = arith.constant 0 : i32
    return %c0_i32, %c0_i32_0 : i32, i32
  }
  func.func @transform_4(%arg0: i32) -> (i32, i32) {
    %c0_i32 = arith.constant 0 : i32
    %c0_i32_0 = arith.constant 0 : i32
    %c0_i32_1 = arith.constant 0 : i32
    return %c0_i32, %c0_i32_0 : i32, i32
  }
  func.func @transform_5(%arg0: i32) -> (i32, i32) {
    %c0_i32 = arith.constant 0 : i32
    %c0_i32_0 = arith.constant 0 : i32
    %c0_i32_1 = arith.constant 0 : i32
    return %c0_i32, %c0_i32_0 : i32, i32
  }
  func.func @transform_6(%arg0: i32) -> (i32, i32) {
    %c0_i32 = arith.constant 0 : i32
    %c0_i32_0 = arith.constant 0 : i32
    %c0_i32_1 = arith.constant 0 : i32
    return %c0_i32, %c0_i32_0 : i32, i32
  }
  func.func @transform_7(%arg0: i32) -> (i32, i32) {
    %c0_i32 = arith.constant 0 : i32
    %c0_i32_0 = arith.constant 0 : i32
    %c0_i32_1 = arith.constant 0 : i32
    return %c0_i32, %c0_i32_0 : i32, i32
  }
  func.func @transform_8(%arg0: i32) -> (i32, i32) {
    %c0_i32 = arith.constant 0 : i32
    %c0_i32_0 = arith.constant 0 : i32
    %c0_i32_1 = arith.constant 0 : i32
    return %c0_i32, %c0_i32_0 : i32, i32
  }
  func.func @transform_9(%arg0: i32) -> (i32, i32) {
    %c0_i32 = arith.constant 0 : i32
    %c0_i32_0 = arith.constant 0 : i32
    return %arg0, %c0_i32 : i32, i32
  }
}

</mosaic_0001>

<bundles_post_ra>
// kernel: tpu_custom_call.1
= control target key start
LH: loop header
LB: loop body
LE: loop exit
PB: predicated region body
PF: predicated region fallthrough
CT: control target
= control target key end

     0   :  { %14 = vsyncpa [#allocation3], 0  ;;  %s1793_s0 = inlined_call_operand.hbm [shape: bf16[16,32], index: 0, kind: input, shape index: {}]   ;;  %s1794_s1 = inlined_call_operand.hbm [shape: bf16[32,512], index: 1, kind: input, shape index: {}]   ;;  %s1795_s2 = inlined_call_operand.vmem [shape: f32[1,512], index: 2, kind: input, shape index: {}]   ;;  %s1796_s3 = inlined_call_operand.hbm [shape: bf16[512,256], index: 3, kind: input, shape index: {}]   ;;  %s1797_s4 = inlined_call_operand.vmem [shape: f32[1,256], index: 4, kind: input, shape index: {}]   ;;  %s1798_s5 = inlined_call_operand.hbm [shape: bf16[256,128], index: 5, kind: input, shape index: {}]   ;;  %s1799_s6 = inlined_call_operand.vmem [shape: f32[1,128], index: 6, kind: input, shape index: {}]   ;;  %s1800_s7 = inlined_call_operand.hbm [shape: bf16[128,128], index: 7, kind: input, shape index: {}]   ;;  %s1801_s8 = inlined_call_operand.vmem [shape: f32[1,128], index: 8, kind: input, shape index: {}]   ;;  %s1802_s9 = inlined_call_operand.hbm [shape: bf16[16,128], index: 9, kind: output, shape index: {}]  }
   0x1   :  { %15 = vsyncpa [#allocation6], 0 }
   0x2   :  { %16 = vsyncpa [#allocation9], 0 }
   0x3   :  { %17 = vsyncpa [#allocation4], 0  ;;  %s1611_s30 = smov [#allocation5]   ;;  %s1471_s13 = scalar_lea.hbm %s1794_s1, 1024 }
   0x4   :  { %s35_s10 = sshll.u32 %s1611_s30, 4  ;;  %p1472_p0 = scmp.ne.s32.totalorder %s1794_s1, %s1471_s13  ;;  %s36_s10 = int_to_ptr.vmem [resolvable:$true] %s35_s10 }
   0x5   :  { %p1475_p1 = scmp.lt.u32.totalorder %s1471_s13, %s1794_s1 }
   0x7   :  { %p1477_p2 = pnand %p1475_p1, %p1472_p0 }
   0x9   :  { %1480 = shalt.err (!%p1477_p2)
}
   0xa   :  { %s1481_s18 = scalar_lea.vmem %s36_s10, 1024  ;;  %p1486_p4 = scmp.lt.s32.totalorder %s36_s10, %s36_s10 }
   0xb   :  { %p1482_p3 = scmp.ne.s32.totalorder %s36_s10, %s1481_s18  ;;  %p1487_p5 = scmp.lt.s32.totalorder %s1481_s18, %s1481_s18 }
   0xd   :  { %p1488_p6 = por %p1487_p5, %p1486_p4 }
   0xf   :  { %p1489_p7 = pnand %p1488_p6, %p1482_p3 }
  0x11   :  { %1492 = shalt.err (!%p1489_p7)
}
  0x12   :  { %s1612_s19 = smov 256   ;;  %s1613_s20 = smov 16  }
  0x13   :  { %41 = dma.hbm_to_vmem [thread:$0]  %s1794_s1, 1024, %s36_s10, [#allocation6], %s1612_s19, %s1612_s19, %s1613_s20  }
  0x14   :  { %s1614_s23 = smov [#allocation8]   ;;  %s1615_s25 = smov [#allocation2]  }
  0x15   :  { %s63_s24 = sshll.u32 %s1614_s23, 4  ;;  %s23_s26 = sshll.u32 %s1615_s25, 4  ;;  %s64_s24 = int_to_ptr.vmem [resolvable:$true] %s63_s24  ;;  %s24_s26 = int_to_ptr.vmem [resolvable:$true] %s23_s26 }
  0x16   :  { %s1493_s29 = scalar_lea.hbm %s1798_s5, 2048 }
  0x17   :  { %p1494_p8 = scmp.ne.s32.totalorder %s1798_s5, %s1493_s29  ;;  %p1497_p9 = scmp.lt.u32.totalorder %s1493_s29, %s1798_s5 }
  0x19   :  { %p1499_p10 = pnand %p1497_p9, %p1494_p8 }
  0x1b   :  { %1502 = shalt.err (!%p1499_p10)
}
  0x1c   :  { %s1503_s1 = scalar_lea.vmem %s64_s24, 2048  ;;  %p1508_p12 = scmp.lt.s32.totalorder %s64_s24, %s64_s24 }
  0x1d   :  { %p1504_p11 = scmp.ne.s32.totalorder %s64_s24, %s1503_s1  ;;  %p1509_p13 = scmp.lt.s32.totalorder %s1503_s1, %s1503_s1 }
  0x1f   :  { %p1510_p0 = por %p1509_p13, %p1508_p12 }
  0x21   :  { %p1511_p1 = pnand %p1510_p0, %p1504_p11 }
  0x23   :  { %1514 = shalt.err (!%p1511_p1)
}
  0x24   :  { %s1616_s10 = smov 64   ;;  %s1617_s14 = smov 4  }
  0x25   :  { %69 = dma.hbm_to_vmem [thread:$0]  %s1798_s5, 2048, %s64_s24, [#allocation9], %s1616_s10, %s1616_s10, %s1617_s14  }
  0x26   :  { %s1515_s19 = scalar_lea.hbm %s1793_s0, 128 }
  0x27   :  { %p1516_p2 = scmp.ne.s32.totalorder %s1793_s0, %s1515_s19  ;;  %p1519_p3 = scmp.lt.u32.totalorder %s1515_s19, %s1793_s0 }
  0x29   :  { %p1521_p4 = pnand %p1519_p3, %p1516_p2 }
  0x2b   :  { %1524 = shalt.err (!%p1521_p4)
}
  0x2c   :  { %s1525_s25 = scalar_lea.vmem %s24_s26, 128  ;;  %p1530_p6 = scmp.lt.s32.totalorder %s24_s26, %s24_s26 }
  0x2d   :  { %p1526_p5 = scmp.ne.s32.totalorder %s24_s26, %s1525_s25  ;;  %p1531_p7 = scmp.lt.s32.totalorder %s1525_s25, %s1525_s25 }
  0x2f   :  { %p1532_p8 = por %p1531_p7, %p1530_p6 }
  0x31   :  { %p1533_p9 = pnand %p1532_p8, %p1526_p5 }
  0x33   :  { %1536 = shalt.err (!%p1533_p9)
}
  0x34   :  { %29 = dma.hbm_to_vmem [thread:$0]  %s1793_s0, 128, %s24_s26, [#allocation3], %s1616_s10, %s1616_s10, %s1617_s14  }
  0x35   :  { %s1618_s27 = smov [#allocation7]   ;;  %s1537_s11 = scalar_lea.hbm %s1796_s3, 8192 }
  0x36   :  { %s49_s28 = sshll.u32 %s1618_s27, 4  ;;  %p1538_p10 = scmp.ne.s32.totalorder %s1796_s3, %s1537_s11  ;;  %s50_s28 = int_to_ptr.vmem [resolvable:$true] %s49_s28 }
  0x37   :  { %p1541_p11 = scmp.lt.u32.totalorder %s1537_s11, %s1796_s3 }
  0x39   :  { %p1543_p12 = pnand %p1541_p11, %p1538_p10 }
  0x3b   :  { %1546 = shalt.err (!%p1543_p12)
}
  0x3c   :  { %s1547_s16 = scalar_lea.vmem %s50_s28, 8192  ;;  %p1552_p0 = scmp.lt.s32.totalorder %s50_s28, %s50_s28 }
  0x3d   :  { %p1548_p13 = scmp.ne.s32.totalorder %s50_s28, %s1547_s16  ;;  %p1553_p1 = scmp.lt.s32.totalorder %s1547_s16, %s1547_s16 }
  0x3f   :  { %p1554_p2 = por %p1553_p1, %p1552_p0 }
  0x41   :  { %p1555_p3 = pnand %p1554_p2, %p1548_p13 }
  0x43   :  { %1558 = shalt.err (!%p1555_p3)
}
  0x44   :  { %s1619_s0 = smov 128   ;;  %s1620_s26 = smov 8  }
  0x45   :  { %55 = dma.hbm_to_vmem [thread:$0]  %s1796_s3, 8192, %s50_s28, [#allocation6], %s1619_s0, %s1619_s0, %s1620_s26  }
  0x46   :  { %s1621_s19 = smov [#allocation10]   ;;  %s1559_s23 = scalar_lea.hbm %s1800_s7, 1024 }
  0x47   :  { %s77_s20 = sshll.u32 %s1621_s19, 4  ;;  %p1560_p4 = scmp.ne.s32.totalorder %s1800_s7, %s1559_s23  ;;  %s78_s20 = int_to_ptr.vmem [resolvable:$true] %s77_s20 }
  0x48   :  { %p1563_p5 = scmp.lt.u32.totalorder %s1559_s23, %s1800_s7 }
  0x4a   :  { %p1565_p6 = pnand %p1563_p5, %p1560_p4 }
  0x4c   :  { %1568 = shalt.err (!%p1565_p6)
}
  0x4d   :  { %s1569_s29 = scalar_lea.vmem %s78_s20, 1024  ;;  %p1574_p8 = scmp.lt.s32.totalorder %s78_s20, %s78_s20 }
  0x4e   :  { %p1570_p7 = scmp.ne.s32.totalorder %s78_s20, %s1569_s29  ;;  %p1575_p9 = scmp.lt.s32.totalorder %s1569_s29, %s1569_s29 }
  0x50   :  { %p1576_p10 = por %p1575_p9, %p1574_p8 }
  0x52   :  { %p1577_p11 = pnand %p1576_p10, %p1570_p7 }
  0x54   :  { %1580 = shalt.err (!%p1577_p11)
}
  0x55   :  { %83 = dma.hbm_to_vmem [thread:$0]  %s1800_s7, 1024, %s78_s20, [#allocation9], %s1616_s10, %s1616_s10, %s1617_s14  }
  0x56   :  { %1603 = dma.done.wait [#allocation3], 128  }
  0x57   :  { %1604 = vsyncadd [#allocation3], 4294967168 }
  0x58   :  { %1605 = dma.done.wait [#allocation6], 9216  }
  0x59   :  { %1606 = vsyncadd [#allocation6], 4294958080 }
  0x5a   :  { %1607 = dma.done.wait [#allocation9], 3072  }
  0x5b   :  { %1608 = vsyncadd [#allocation9], 4294964224  ;;  %v1622_v0 = vmov 0   ;;  %v1330_v1 = vld [vmem:[#allocation5 + $0x4] ss:$16 sps:$4 sm:$0xff]   ;;  %v1336_v6 = vld [vmem:[#allocation2] sm:$0xff]   ;;  %v114_v53 = vlaneseq }
  0x5c   :  { %215 = vmatprep.mubr.bf16.mxu1 %v1622_v0  ;;  %v1332_v2 = vld [vmem:[#allocation5] ss:$16 sps:$4 sm:$0xff]   ;;  %183 = vmatprep.subr.bf16.mxu1 %v1330_v1  ;;  %v1333_v3 = vld [vmem:[#allocation5 + $0x24] ss:$16 sps:$4 sm:$0xff]   ;;  %v1339_v5 = vld [vmem:[#allocation5 + $0xc] ss:$16 sps:$4 sm:$0xff]  }
  0x5d   :  { %184 = vmatpush1.bf16.msra.mxu1 %v1332_v2  ;;  %v1335_v4 = vld [vmem:[#allocation5 + $0x20] ss:$16 sps:$4 sm:$0xff]   ;;  %v1337_v7 = vld [vmem:[#allocation5 + $0x8] ss:$16 sps:$4 sm:$0xff]   ;;  %vm179_vm0 = vcmask 261120   ;;  %v1748_v54 = vshrl.u32 %v114_v53, 7 }
  0x5e   :  { %185 = vmatprep.subr.bf16.mxu1 %v1333_v3  ;;  %v1343_v8 = vld [vmem:[#allocation7 + $0x4] ss:$8 sps:$4 sm:$0xff]   ;;  %v1345_v9 = vld [vmem:[#allocation7] ss:$8 sps:$4 sm:$0xff]   ;;  %v1346_v11 = vld [vmem:[#allocation7 + $0x14] ss:$8 sps:$4 sm:$0xff]  }
  0x5f   :  { %v1342_v10 = vld [vmem:[#allocation5 + $0x2c] ss:$16 sps:$4 sm:$0xff]   ;;  %693 = vmatprep.subr.bf16.mxu0 %v1343_v8  ;;  %v1348_v12 = vld [vmem:[#allocation7 + $0x10] ss:$8 sps:$4 sm:$0xff]   ;;  %v1351_v15 = vld [vmem:[#allocation7 + $0x20] ss:$8 sps:$4 sm:$0xff]  }
  0x60   :  { %694 = vmatpush1.bf16.msra.mxu0 %v1345_v9  ;;  %v1340_v13 = vld [vmem:[#allocation5 + $0x28] ss:$16 sps:$4 sm:$0xff]   ;;  %v1349_v14 = vld [vmem:[#allocation7 + $0x24] ss:$8 sps:$4 sm:$0xff]   ;;  %v1352_v16 = vld [vmem:[#allocation7 + $0x34] ss:$8 sps:$4 sm:$0xff]  }
  0x61   :  { %186 = vmatpush1.bf16.msra.mxu1 %v1335_v4  ;;  %695 = vmatprep.subr.bf16.mxu0 %v1346_v11  ;;  %v1354_v17 = vld [vmem:[#allocation7 + $0x30] ss:$8 sps:$4 sm:$0xff]   ;;  %v1355_v18 = vld [vmem:[#allocation7 + $0x44] ss:$8 sps:$4 sm:$0xff]   ;;  %v1357_v19 = vld [vmem:[#allocation7 + $0x40] ss:$8 sps:$4 sm:$0xff]  }
  0x62   :  { %226 = vmatprep.subr.bf16.mxu1 %v1339_v5  ;;  %v1358_v20 = vld [vmem:[#allocation7 + $0x54] ss:$8 sps:$4 sm:$0xff]   ;;  %v1360_v21 = vld [vmem:[#allocation7 + $0x50] ss:$8 sps:$4 sm:$0xff]   ;;  %v1361_v22 = vld [vmem:[#allocation7 + $0x64] ss:$8 sps:$4 sm:$0xff]  }
  0x63   :  { %v1363_v23 = vld [vmem:[#allocation7 + $0x60] ss:$8 sps:$4 sm:$0xff]   ;;  %v1364_v24 = vld [vmem:[#allocation7 + $0x74] ss:$8 sps:$4 sm:$0xff]   ;;  %v1366_v25 = vld [vmem:[#allocation7 + $0x70] ss:$8 sps:$4 sm:$0xff]  }
  0x64   :  { %1155 = vmatmul.mubr.msk.bf16.vlgmr.msra.gmra.mrb[0].mxu1 %vm179_vm0, %v1336_v6  ;;  %696 = vmatpush1.bf16.msra.mxu0 %v1348_v12  ;;  %v1367_v26 = vld [vmem:[#allocation7 + $0x84] ss:$8 sps:$4 sm:$0xff]   ;;  %v1369_v27 = vld [vmem:[#allocation7 + $0x80] ss:$8 sps:$4 sm:$0xff]   ;;  %v1370_v28 = vld [vmem:[#allocation7 + $0x94] ss:$8 sps:$4 sm:$0xff]  }
  0x65   :  { %227 = vmatpush1.bf16.msra.mxu1 %v1337_v7  ;;  %258 = vmatprep.mubr.bf16.mxu1 %v1622_v0  ;;  %v1372_v29 = vld [vmem:[#allocation7 + $0x90] ss:$8 sps:$4 sm:$0xff]   ;;  %v1373_v30 = vld [vmem:[#allocation7 + $0xa4] ss:$8 sps:$4 sm:$0xff]   ;;  %v1375_v31 = vld [vmem:[#allocation7 + $0xa0] ss:$8 sps:$4 sm:$0xff]  }
  0x66   :  { %228 = vmatprep.subr.bf16.mxu1 %v1342_v10  ;;  %697 = vmatprep.subr.bf16.mxu0 %v1349_v14  ;;  %v1376_v32 = vld [vmem:[#allocation7 + $0xb4] ss:$8 sps:$4 sm:$0xff]   ;;  %v1378_v33 = vld [vmem:[#allocation7 + $0xb0] ss:$8 sps:$4 sm:$0xff]   ;;  %v1379_v34 = vld [vmem:[#allocation7 + $0xc4] ss:$8 sps:$4 sm:$0xff]  }
  0x67   :  { %v1381_v35 = vld [vmem:[#allocation7 + $0xc0] ss:$8 sps:$4 sm:$0xff]   ;;  %v1382_v36 = vld [vmem:[#allocation7 + $0xd4] ss:$8 sps:$4 sm:$0xff]   ;;  %v1384_v37 = vld [vmem:[#allocation7 + $0xd0] ss:$8 sps:$4 sm:$0xff]  }
  0x68   :  { %698 = vmatpush1.bf16.msra.mxu0 %v1351_v15  ;;  %v1385_v38 = vld [vmem:[#allocation7 + $0xe4] ss:$8 sps:$4 sm:$0xff]   ;;  %v1387_v39 = vld [vmem:[#allocation7 + $0xe0] ss:$8 sps:$4 sm:$0xff]   ;;  %v1388_v40 = vld [vmem:[#allocation7 + $0xf4] ss:$8 sps:$4 sm:$0xff]  }
  0x69   :  { %229 = vmatpush1.bf16.msra.mxu1 %v1340_v13  ;;  %699 = vmatprep.subr.bf16.mxu0 %v1352_v16  ;;  %v1390_v41 = vld [vmem:[#allocation7 + $0xf0] ss:$8 sps:$4 sm:$0xff]   ;;  %v1393_v42 = vld [vmem:[#allocation7 + $0x104] ss:$8 sps:$4 sm:$0xff]   ;;  %v116_v55 = vsub.s32 0, %v1748_v54  ;;  %v120_v57 = vsub.s32 1, %v1748_v54 }
  0x6a   :  { %v1439_v43 = vld [vmem:[#allocation8 + $0x40] sm:$0xff]   ;;  %v1441_v45 = vld [vmem:[#allocation8 + $0x48] sm:$0xff]   ;;  %v1443_v47 = vld [vmem:[#allocation8 + $0x50] sm:$0xff]   ;;  %v124_v63 = vsub.s32 2, %v1748_v54  ;;  %v128_v2 = vsub.s32 3, %v1748_v54  ;;  %vm1624_vm13 = vmmov 0  }
  0x6b   :  { %v1440_v44 = vld [vmem:[#allocation8] sm:$0xff]   ;;  %1256 = vmatprep.subr.bf16.mxu1 %v1439_v43  ;;  %v1442_v46 = vld [vmem:[#allocation8 + $0x8] sm:$0xff]   ;;  %v1444_v48 = vld [vmem:[#allocation8 + $0x10] sm:$0xff]  }
  0x6c   :  { %1156 = vmatmul.mubr.msk.bf16.vlgmr.msra.gmra.mrb[4].mxu1 %vm179_vm0, %v1336_v6  ;;  %700 = vmatpush1.bf16.msra.mxu0 %v1354_v17  ;;  %v1445_v49 = vld [vmem:[#allocation8 + $0x58] sm:$0xff]   ;;  %v1447_v51 = vld [vmem:[#allocation8 + $0x60] sm:$0xff]  }
  0x6d   :  { %701 = vmatprep.subr.bf16.mxu0 %v1355_v18  ;;  %1257 = vmatpush3.bf16.msra.mxu1 %v1440_v44  ;;  %v1446_v50 = vld [vmem:[#allocation8 + $0x18] sm:$0xff]   ;;  %v1448_v52 = vld [vmem:[#allocation8 + $0x20] sm:$0xff]  }
  0x6e   :  { %1258 = vmatprep.subr.bf16.mxu1 %v1441_v45  ;;  %v112_v56 = vld [vmem:[%s1795_s2] sm:$0xf]  ;;  %v1405_v43 = vld [vmem:[#allocation7 + $0x144] ss:$8 sps:$4 sm:$0xff]   ;;  %v1403_v44 = vld [vmem:[#allocation7 + $0x140] ss:$8 sps:$4 sm:$0xff]  }
  0x6f   :  { %v117_v58 = vrot.slane %v112_v56, %v116_v55  ;;  %v121_v59 = vrot.slane %v112_v56, %v120_v57  ;;  %v125_v9 = vrot.slane %v112_v56, %v124_v63  ;;  %v129_v11 = vrot.slane %v112_v56, %v128_v2  ;;  %v1408_v45 = vld [vmem:[#allocation7 + $0x154] ss:$8 sps:$4 sm:$0xff]   ;;  %v1429_v63 = vld [vmem:[#allocation7 + $0x1c4] ss:$8 sps:$4 sm:$0xff]   ;;  %v1430_v2 = vld [vmem:[#allocation7 + $0x1d0] ss:$8 sps:$4 sm:$0xff]  }
  0x70   :  { %702 = vmatpush1.bf16.msra.mxu0 %v1357_v19  ;;  %v1391_v19 = vld [vmem:[#allocation7 + $0x100] ss:$8 sps:$4 sm:$0xff]   ;;  %v1420_v56 = vld [vmem:[#allocation7 + $0x194] ss:$8 sps:$4 sm:$0xff]  }
  0x71   :  { %703 = vmatprep.subr.bf16.mxu0 %v1358_v20  ;;  %1259 = vmatpush3.bf16.msra.mxu1 %v1442_v46  ;;  %v1406_v46 = vld [vmem:[#allocation7 + $0x150] ss:$8 sps:$4 sm:$0xff]  }
  0x72   :  { %1260 = vmatprep.subr.bf16.mxu1 %v1443_v47  ;;  %v1411_v47 = vld [vmem:[#allocation7 + $0x164] ss:$8 sps:$4 sm:$0xff]  }
  0x74   :  { %704 = vmatpush1.bf16.msra.mxu0 %v1360_v21 }
  0x75   :  { %705 = vmatprep.subr.bf16.mxu0 %v1361_v22  ;;  %1261 = vmatpush3.bf16.msra.mxu1 %v1444_v48  ;;  %v1396_v22 = vld [vmem:[#allocation7 + $0x114] ss:$8 sps:$4 sm:$0xff]   ;;  %v1409_v48 = vld [vmem:[#allocation7 + $0x160] ss:$8 sps:$4 sm:$0xff]  }
  0x76   :  { %1262 = vmatprep.subr.bf16.mxu1 %v1445_v49  ;;  %v1414_v49 = vld [vmem:[#allocation7 + $0x174] ss:$8 sps:$4 sm:$0xff]  }
  0x78   :  { %706 = vmatpush1.bf16.msra.mxu0 %v1363_v23 }
  0x79   :  { %707 = vmatprep.subr.bf16.mxu0 %v1364_v24  ;;  %1263 = vmatpush3.bf16.msra.mxu1 %v1446_v50  ;;  %v1412_v50 = vld [vmem:[#allocation7 + $0x170] ss:$8 sps:$4 sm:$0xff]  }
  0x7a   :  { %1264 = vmatprep.subr.bf16.mxu1 %v1447_v51  ;;  %v1417_v51 = vld [vmem:[#allocation7 + $0x184] ss:$8 sps:$4 sm:$0xff]  }
  0x7c   :  { %708 = vmatpush1.bf16.msra.mxu0 %v1366_v25 }
  0x7d   :  { %709 = vmatprep.subr.bf16.mxu0 %v1367_v26  ;;  %1265 = vmatpush3.bf16.msra.mxu1 %v1448_v52  ;;  %v1415_v52 = vld [vmem:[#allocation7 + $0x180] ss:$8 sps:$4 sm:$0xff]  }
  0x80   :  { %710 = vmatpush1.bf16.msra.mxu0 %v1369_v27 }
  0x81   :  { %711 = vmatprep.subr.bf16.mxu0 %v1370_v28 }
  0x84   :  { %712 = vmatpush1.bf16.msra.mxu0 %v1372_v29 }
  0x85   :  { %713 = vmatprep.subr.bf16.mxu0 %v1373_v30  ;;  %v1394_v30 = vld [vmem:[#allocation7 + $0x110] ss:$8 sps:$4 sm:$0xff]  }
  0x88   :  { %714 = vmatpush1.bf16.msra.mxu0 %v1375_v31 }
  0x89   :  { %715 = vmatprep.subr.bf16.mxu0 %v1376_v32 }
  0x8c   :  { %716 = vmatpush1.bf16.msra.mxu0 %v1378_v33  ;;  %v1399_v33 = vld [vmem:[#allocation7 + $0x124] ss:$8 sps:$4 sm:$0xff]  }
  0x8d   :  { %717 = vmatprep.subr.bf16.mxu0 %v1379_v34 }
  0x90   :  { %718 = vmatpush1.bf16.msra.mxu0 %v1381_v35 }
  0x91   :  { %719 = vmatprep.subr.bf16.mxu0 %v1382_v36 }
  0x94   :  { %720 = vmatpush1.bf16.msra.mxu0 %v1384_v37 }
  0x95   :  { %721 = vmatprep.subr.bf16.mxu0 %v1385_v38 }
  0x98   :  { %722 = vmatpush1.bf16.msra.mxu0 %v1387_v39  ;;  %v1397_v39 = vld [vmem:[#allocation7 + $0x120] ss:$8 sps:$4 sm:$0xff]  }
  0x99   :  { %723 = vmatprep.subr.bf16.mxu0 %v1388_v40 }
  0x9c   :  { %724 = vmatpush1.bf16.msra.mxu0 %v1390_v41  ;;  %v1402_v41 = vld [vmem:[#allocation7 + $0x134] ss:$8 sps:$4 sm:$0xff]  }
  0x9d   :  { %736 = vmatprep.subr.bf16.mxu0 %v1393_v42  ;;  %v1400_v42 = vld [vmem:[#allocation7 + $0x130] ss:$8 sps:$4 sm:$0xff]  }
 0x137   :  { %v217_v60 = vpop.f32.mrb[0].mxu1 }
 0x138   :  { %v218_v61 = vadd.f32 %v217_v60, %v117_v58  ;;  %v219_v62 = vpop.f32.mrb[1].mxu1  ;;  %v1421_v60 = vld [vmem:[#allocation7 + $0x1a0] ss:$8 sps:$4 sm:$0xff]  }
 0x139   :  { %v220_v0 = vadd.f32 %v219_v62, %v121_v59  ;;  %v221_v1 = vpop.f32.mrb[2].mxu1  ;;  %v1424_v62 = vld [vmem:[#allocation7 + $0x1b0] ss:$8 sps:$4 sm:$0xff]  }
 0x13a   :  { %v277_v3 = vmul.f32 0.01, %v218_v61  ;;  %v222_v4 = vadd.f32 %v221_v1, %v117_v58  ;;  %v223_v5 = vpop.f32.mrb[3].mxu1  ;;  %vm269_vm1 = vcmp.gt.f32.partialorder %v218_v61, 0.0  ;;  %v1418_v58 = vld [vmem:[#allocation7 + $0x190] ss:$8 sps:$4 sm:$0xff]  }
 0x13b   :  { %v278_v6 = vmul.f32 0.01, %v220_v0  ;;  %v224_v7 = vadd.f32 %v223_v5, %v121_v59  ;;  %vm270_vm3 = vcmp.gt.f32.partialorder %v220_v0, 0.0  ;;  %v1423_v59 = vld [vmem:[#allocation7 + $0x1a4] ss:$8 sps:$4 sm:$0xff]  }
 0x13c   :  { %vm273_vm2 = vcmp.gt.f32.partialorder %v222_v4, 0.0  ;;  %v281_v8 = vmul.f32 0.01, %v222_v4  ;;  %v285_v12 = vsel %vm269_vm1, %v218_v61, %v277_v3  ;;  %v1426_v61 = vld [vmem:[#allocation7 + $0x1b4] ss:$8 sps:$4 sm:$0xff]  }
 0x13d   :  { %v282_v10 = vmul.f32 0.01, %v224_v7  ;;  %vm274_vm4 = vcmp.gt.f32.partialorder %v224_v7, 0.0  ;;  %v286_v14 = vsel %vm270_vm3, %v220_v0, %v278_v6  ;;  %v1427_v0 = vld [vmem:[#allocation7 + $0x1c0] ss:$8 sps:$4 sm:$0xff]  }
 0x13e   :  { %v289_v13 = vsel %vm273_vm2, %v222_v4, %v281_v8  ;;  %v1432_v1 = vld [vmem:[#allocation7 + $0x1d4] ss:$8 sps:$4 sm:$0xff]   ;;  %v1435_v3 = vld [vmem:[#allocation7 + $0x1e4] ss:$8 sps:$4 sm:$0xff]   ;;  %v1433_v4 = vld [vmem:[#allocation7 + $0x1e0] ss:$8 sps:$4 sm:$0xff]  }
 0x13f   :  { %v290_v15 = vsel %vm274_vm4, %v224_v7, %v282_v10  ;;  %v293_v16 = vpack.c.bf16 %v289_v13, %v285_v12  ;;  %v260_v17 = vpop.f32.mrb[4].mxu1  ;;  %v1438_v5 = vld [vmem:[#allocation7 + $0x1f4] ss:$8 sps:$4 sm:$0xff]   ;;  %v1436_v6 = vld [vmem:[#allocation7 + $0x1f0] ss:$8 sps:$4 sm:$0xff]   ;;  %v1449_v7 = vld [vmem:[#allocation8 + $0x68] sm:$0xff]  }
 0x140   :  { %v294_v18 = vpack.c.bf16 %v290_v15, %v286_v14  ;;  %v261_v20 = vadd.f32 %v260_v17, %v125_v9  ;;  %v262_v21 = vpop.f32.mrb[5].mxu1  ;;  %v1450_v8 = vld [vmem:[#allocation8 + $0x28] sm:$0xff]   ;;  %1266 = vmatprep.subr.bf16.mxu1 %v1449_v7  ;;  %v1452_v10 = vld [vmem:[#allocation8 + $0x30] sm:$0xff]   ;;  %v1454_v12 = vld [vmem:[#allocation8 + $0x38] sm:$0xff]   ;;  %v1623_v13 = vmov 0.0  }
 0x141   :  { %v263_v23 = vadd.f32 %v262_v21, %v129_v11  ;;  %v264_v24 = vpop.f32.mrb[6].mxu1  ;;  %1267 = vmatpush3.bf16.msra.mxu1 %v1450_v8  ;;  %v361_v14 = vld [vmem:[%s1797_s4] sm:$0x3] }
 0x142   :  { %725 = vmatprep.mubr.bf16.mxu0 %v294_v18  ;;  %vm271_vm5 = vcmp.gt.f32.partialorder %v261_v20, 0.0  ;;  %v279_v25 = vmul.f32 0.01, %v261_v20  ;;  %v265_v26 = vadd.f32 %v264_v24, %v125_v9  ;;  %v266_v27 = vpop.f32.mrb[7].mxu1  ;;  %v1451_v9 = vld [vmem:[#allocation8 + $0x70] sm:$0xff]   ;;  %v366_v15 = vrot.slane %v361_v14, %v116_v55 }
 0x143   :  { %726 = vmatmul.mubr.bf16.vlgmr.msra.gmra.mrb[0].mxu0 %v293_v16  ;;  %vm272_vm6 = vcmp.gt.f32.partialorder %v263_v23, 0.0  ;;  %v280_v28 = vmul.f32 0.01, %v263_v23  ;;  %v267_v29 = vadd.f32 %v266_v27, %v129_v11  ;;  %1268 = vmatprep.subr.bf16.mxu1 %v1451_v9  ;;  %v1453_v11 = vld [vmem:[#allocation8 + $0x78] sm:$0xff]   ;;  %v370_v16 = vrot.slane %v361_v14, %v120_v57 }
 0x144   :  { %737 = vmatpush1.bf16.msra.mxu0 %v1391_v19  ;;  %v1761_v31 = vsel %vm271_vm5, %v261_v20, %v279_v25  ;;  %vm275_vm7 = vcmp.gt.f32.partialorder %v265_v26, 0.0  ;;  %v283_v32 = vmul.f32 0.01, %v265_v26 }
 0x145   :  { %738 = vmatprep.subr.bf16.mxu0 %v1396_v22  ;;  %vm276_vm8 = vcmp.gt.f32.partialorder %v267_v29, 0.0  ;;  %v284_v34 = vmul.f32 0.01, %v267_v29  ;;  %v288_v35 = vsel %vm272_vm6, %v263_v23, %v280_v28  ;;  %1269 = vmatpush3.bf16.msra.mxu1 %v1452_v10 }
 0x146   :  { %v291_v36 = vsel %vm275_vm7, %v265_v26, %v283_v32  ;;  %1270 = vmatprep.subr.bf16.mxu1 %v1453_v11  ;;  %v1455_v32 = vld [vmem:[#allocation10] sm:$0xff]  }
 0x147   :  { %v295_v37 = vpack.c.bf16 %v291_v36, %v1761_v31  ;;  %v292_v38 = vsel %vm276_vm8, %v267_v29, %v284_v34  ;;  %v1457_v34 = vld [vmem:[#allocation10 + $0x10] sm:$0xff]   ;;  %v1459_v36 = vld [vmem:[#allocation10 + $0x20] sm:$0xff]  }
 0x148   :  { %739 = vmatpush1.bf16.msra.mxu0 %v1394_v30  ;;  %v296_v40 = vpack.c.bf16 %v292_v38, %v288_v35  ;;  %v1458_v35 = vld [vmem:[#allocation10 + $0x18] sm:$0xff]   ;;  %v1461_v38 = vld [vmem:[#allocation10 + $0x30] sm:$0xff]  }
 0x149   :  { %740 = vmatprep.subr.bf16.mxu0 %v1399_v33  ;;  %1271 = vmatpush3.bf16.msra.mxu1 %v1454_v12  ;;  %v1456_v33 = vld [vmem:[#allocation10 + $0x8] sm:$0xff]  }
 0x14a   :  { %768 = vmatprep.mubr.bf16.mxu0 %v296_v40  ;;  %1287 = vmatprep.subr.bf16.mxu1 %v1623_v13 }
 0x14c   :  { %741 = vmatpush1.bf16.msra.mxu0 %v1397_v39  ;;  %v1462_v39 = vld [vmem:[#allocation10 + $0x38] sm:$0xff]  }
 0x14d   :  { %742 = vmatprep.subr.bf16.mxu0 %v1402_v41  ;;  %v1221_v41 = vld [vmem:[%s1799_s6] ss:$0 sm:$0xff]  ;;  %s1625_s6 = smov [#allocation11]  }
 0x150   :  { %743 = vmatpush1.bf16.msra.mxu0 %v1400_v42 }
 0x151   :  { %744 = vmatprep.subr.bf16.mxu0 %v1405_v43 }
 0x154   :  { %745 = vmatpush1.bf16.msra.mxu0 %v1403_v44 }
 0x155   :  { %746 = vmatprep.subr.bf16.mxu0 %v1408_v45 }
 0x158   :  { %747 = vmatpush1.bf16.msra.mxu0 %v1406_v46 }
 0x159   :  { %748 = vmatprep.subr.bf16.mxu0 %v1411_v47 }
 0x15c   :  { %749 = vmatpush1.bf16.msra.mxu0 %v1409_v48 }
 0x15d   :  { %750 = vmatprep.subr.bf16.mxu0 %v1414_v49 }
 0x160   :  { %751 = vmatpush1.bf16.msra.mxu0 %v1412_v50 }
 0x161   :  { %752 = vmatprep.subr.bf16.mxu0 %v1417_v51 }
 0x164   :  { %753 = vmatpush1.bf16.msra.mxu0 %v1415_v52 }
 0x165   :  { %754 = vmatprep.subr.bf16.mxu0 %v1420_v56 }
 0x168   :  { %755 = vmatpush1.bf16.msra.mxu0 %v1418_v58  ;;  %v1089_v58 = vand.u32 127, %v114_v53 }
 0x169   :  { %756 = vmatprep.subr.bf16.mxu0 %v1423_v59  ;;  %v1238_v59 = vld [vmem:[%s1801_s8] ss:$0 sm:$0xff]  ;;  %s1132_s8 = sshll.u32 %s1625_s6, 4  ;;  %s1133_s8 = int_to_ptr.vmem [resolvable:$true] %s1132_s8 }
 0x16a   :  { %vm1090_vm0 = vcmp.lt.s32.totalorder %v1089_v58, 10  ;;  %s1581_s15 = scalar_lea.vmem %s1133_s8, 128  ;;  %p1586_p13 = scmp.lt.s32.totalorder %s1133_s8, %s1133_s8 }
 0x16b   :  { %p1582_p12 = scmp.ne.s32.totalorder %s1133_s8, %s1581_s15  ;;  %p1587_p0 = scmp.lt.s32.totalorder %s1581_s15, %s1581_s15 }
 0x16c   :  { %757 = vmatpush1.bf16.msra.mxu0 %v1421_v60 }
 0x16d   :  { %758 = vmatprep.subr.bf16.mxu0 %v1426_v61  ;;  %p1588_p1 = por %p1587_p0, %p1586_p13 }
 0x16f   :  { %p1589_p2 = pnand %p1588_p1, %p1582_p12 }
 0x170   :  { %759 = vmatpush1.bf16.msra.mxu0 %v1424_v62 }
 0x171   :  { %760 = vmatprep.subr.bf16.mxu0 %v1429_v63 }
 0x174   :  { %761 = vmatpush1.bf16.msra.mxu0 %v1427_v0 }
 0x175   :  { %762 = vmatprep.subr.bf16.mxu0 %v1432_v1 }
 0x178   :  { %763 = vmatpush1.bf16.msra.mxu0 %v1430_v2 }
 0x179   :  { %764 = vmatprep.subr.bf16.mxu0 %v1435_v3 }
 0x17c   :  { %765 = vmatpush1.bf16.msra.mxu0 %v1433_v4 }
 0x17d   :  { %766 = vmatprep.subr.bf16.mxu0 %v1438_v5 }
 0x180   :  { %767 = vmatpush1.bf16.msra.mxu0 %v1436_v6 }
 0x183   :  { %769 = vmatmul.mubr.bf16.vlgmr.msra.gmra.mrb[0].mxu0 %v295_v37  ;;  %v1460_v37 = vld [vmem:[#allocation10 + $0x28] sm:$0xff]  }
 0x256   :  { %v770_v17 = vpop.f32.mrb[0].mxu0 }
 0x257   :  { %v1307_v18 = vadd.f32 %v770_v17, %v366_v15  ;;  %v772_v19 = vpop.f32.mrb[1].mxu0 }
 0x258   :  { %v1308_v20 = vadd.f32 %v772_v19, %v370_v16  ;;  %v774_v21 = vpop.f32.mrb[2].mxu0 }
 0x259   :  { %v783_v22 = vmul.f32 0.01, %v1307_v18  ;;  %v1309_v23 = vadd.f32 %v774_v21, %v366_v15  ;;  %v776_v24 = vpop.f32.mrb[3].mxu0  ;;  %vm779_vm9 = vcmp.gt.f32.partialorder %v1307_v18, 0.0 }
 0x25a   :  { %v784_v25 = vmul.f32 0.01, %v1308_v20  ;;  %v1310_v26 = vadd.f32 %v776_v24, %v370_v16  ;;  %vm780_vm10 = vcmp.gt.f32.partialorder %v1308_v20, 0.0 }
 0x25b   :  { %vm781_vm11 = vcmp.gt.f32.partialorder %v1309_v23, 0.0  ;;  %v785_v27 = vmul.f32 0.01, %v1309_v23  ;;  %v787_v55 = vsel %vm779_vm9, %v1307_v18, %v783_v22 }
 0x25c   :  { %vm782_vm12 = vcmp.gt.f32.partialorder %v1310_v26, 0.0  ;;  %v786_v28 = vmul.f32 0.01, %v1310_v26  ;;  %v788_v57 = vsel %vm780_vm10, %v1308_v20, %v784_v25 }
 0x25d   :  { %v789_v29 = vsel %vm781_vm11, %v1309_v23, %v785_v27 }
 0x25e   :  { %v791_v54 = vpack.c.bf16 %v789_v29, %v787_v55  ;;  %v790_v30 = vsel %vm782_vm12, %v1310_v26, %v786_v28 }
 0x25f   :  { %v792_v31 = vpack.c.bf16 %v790_v30, %v788_v57 }
 0x261   :  { %960 = vmatprep.mubr.bf16.mxu1 %v792_v31 }
 0x262   :  { %961 = vmatmul.mubr.bf16.vlgmr.msra.gmra.mrb[8].mxu1 %v791_v54 }
 0x263   :  { %1288 = vmatpush3.bf16.msra.mxu1 %v1455_v32  ;;  %1303 = vmatprep.mubr.msk.bf16.mxu1 %vm1624_vm13, %v1623_v13 }
 0x264   :  { %1289 = vmatprep.subr.bf16.mxu1 %v1623_v13 }
 0x267   :  { %1290 = vmatpush3.bf16.msra.mxu1 %v1456_v33 }
 0x268   :  { %1291 = vmatprep.subr.bf16.mxu1 %v1623_v13 }
 0x26b   :  { %1292 = vmatpush3.bf16.msra.mxu1 %v1457_v34 }
 0x26c   :  { %1293 = vmatprep.subr.bf16.mxu1 %v1623_v13 }
 0x26f   :  { %1294 = vmatpush3.bf16.msra.mxu1 %v1458_v35 }
 0x270   :  { %1295 = vmatprep.subr.bf16.mxu1 %v1623_v13 }
 0x273   :  { %1296 = vmatpush3.bf16.msra.mxu1 %v1459_v36 }
 0x274   :  { %1297 = vmatprep.subr.bf16.mxu1 %v1623_v13 }
 0x277   :  { %1298 = vmatpush3.bf16.msra.mxu1 %v1460_v37 }
 0x278   :  { %1299 = vmatprep.subr.bf16.mxu1 %v1623_v13 }
 0x27b   :  { %1300 = vmatpush3.bf16.msra.mxu1 %v1461_v38 }
 0x27c   :  { %1301 = vmatprep.subr.bf16.mxu1 %v1623_v13 }
 0x27f   :  { %1302 = vmatpush3.bf16.msra.mxu1 %v1462_v39 }
 0x335   :  { %v1272_v40 = vpop.f32.mrb[8].mxu1 }
 0x336   :  { %v1273_v42 = vpop.f32.mrb[9].mxu1 }
 0x337   :  { %v1274_v43 = vadd.f32 %v1273_v42, %v1272_v40  ;;  %v1275_v44 = vpop.f32.mrb[10].mxu1 }
 0x338   :  { %v1276_v45 = vpop.f32.mrb[11].mxu1 }
 0x339   :  { %v963_v46 = vadd.f32 %v1274_v43, %v1221_v41  ;;  %v1277_v47 = vadd.f32 %v1276_v45, %v1275_v44 }
 0x33b   :  { %v971_v48 = vmul.f32 0.01, %v963_v46  ;;  %v966_v49 = vadd.f32 %v1277_v47, %v1221_v41  ;;  %vm969_vm14 = vcmp.gt.f32.partialorder %v963_v46, 0.0 }
 0x33d   :  { %vm970_vm15 = vcmp.gt.f32.partialorder %v966_v49, 0.0  ;;  %v972_v50 = vmul.f32 0.01, %v966_v49  ;;  %v973_v51 = vsel %vm969_vm14, %v963_v46, %v971_v48 }
 0x33f   :  { %v974_v52 = vsel %vm970_vm15, %v966_v49, %v972_v50 }
 0x340   :  { %v975_v56 = vpack.c.bf16 %v974_v52, %v973_v51 }
 0x342   :  { %1304 = vmatmul.mubr.bf16.vlgmr.msra.gmra.mrb[12].mxu1 %v975_v56 }
 0x415   :  { %v1081_v60 = vpop.f32.mrb[12].mxu1 }
 0x416   :  { %v1082_v61 = vadd.f32 %v1238_v59, %v1081_v60  ;;  %v1305_v62 = vpop.f32.mrb[13].mxu1 }
 0x417   :  { %v1084_v63 = vpop.f32.mrb[14].mxu1 }
 0x418   :  { %v1085_v0 = vadd.f32 %v1238_v59, %v1084_v63  ;;  %v1306_v1 = vpop.f32.mrb[15].mxu1  ;;  %v1091_v2 = vsel %vm1090_vm0, %v1082_v61, -inf }
 0x419   :  { %1093 = vmax.xlane.f32.xlu0 %v1091_v2 }
 0x41a   :  { %v1092_v3 = vsel %vm1090_vm0, %v1085_v0, -inf }
 0x41d   :  { %1095 = vmax.xlane.f32.xlu0 %v1092_v3 }
 0x4a6   :  { %v1094_v4 = vpop.xlane.xlu0 %1093 }
 0x4a7   :  { %v1097_v5 = vsub.f32 %v1091_v2, %v1094_v4 }
 0x4a9   :  { %v1099_v6 = vmul.f32 1.442695, %v1097_v5 }
 0x4aa   :  { %v1096_v7 = vpop.xlane.xlu0 %1095 }
 0x4ab   :  { %1463 = vpow2.f32 %v1099_v6  ;;  %v1098_v53 = vsub.f32 %v1092_v3, %v1096_v7 }
 0x4ad   :  { %v1101_v8 = vmul.f32 1.442695, %v1098_v53 }
 0x4af   :  { %1465 = vpow2.f32 %v1101_v8 }
 0x4b5   :  { %v1464_v9 = vpop.eup %1463 }
 0x4b6   :  { %1103 = vadd.xlane.f32.xlu1 %v1464_v9 }
 0x4b9   :  { %v1466_v10 = vpop.eup %1465 }
 0x4ba   :  { %1105 = vadd.xlane.f32.xlu1 %v1466_v10 }
 0x543   :  { %v1104_v11 = vpop.xlane.xlu1 %1103 }
 0x544   :  { %1467 = vrcp.f32 %v1104_v11 }
 0x547   :  { %v1106_v12 = vpop.xlane.xlu1 %1105 }
 0x548   :  { %1469 = vrcp.f32 %v1106_v12 }
 0x54e   :  { %v1468_v13 = vpop.eup %1467 }
 0x54f   :  { %v1109_v14 = vmul.f32 %v1468_v13, %v1104_v11 }
 0x551   :  { %v1111_v15 = vsub.f32 2.0, %v1109_v14 }
 0x552   :  { %v1470_v16 = vpop.eup %1469 }
 0x553   :  { %v1110_v17 = vmul.f32 %v1470_v16, %v1106_v12  ;;  %v1113_v18 = vmul.f32 %v1468_v13, %v1111_v15 }
 0x555   :  { %v1112_v19 = vsub.f32 2.0, %v1110_v17  ;;  %v1115_v22 = vmul.f32 %v1464_v9, %v1113_v18 }
 0x557   :  { %v1114_v20 = vmul.f32 %v1470_v16, %v1112_v19 }
 0x559   :  { %v1116_v21 = vmul.f32 %v1466_v10, %v1114_v20 }
 0x55b   :  { %v1254_v23 = vpack.c.bf16 %v1116_v21, %v1115_v22 }
 0x55d   :  { %1255 = vst [vmem:[#allocation11] sm:$0xff] %v1254_v23  }
 0x55e   :  { %1592 = shalt.err (!%p1589_p2)
}
 0x55f   :  { %s1593_s26 = scalar_lea.hbm %s1802_s9, 128 }
 0x560   :  { %p1594_p3 = scmp.ne.s32.totalorder %s1802_s9, %s1593_s26  ;;  %p1597_p4 = scmp.lt.u32.totalorder %s1593_s26, %s1802_s9 }
 0x562   :  { %p1599_p5 = pnand %p1597_p4, %p1594_p3 }
 0x564   :  { %1602 = shalt.err (!%p1599_p5)
}
 0x565   :  { %1138 = dma.vmem_to_hbm [thread:$0]  %s1133_s8, 128, %s1802_s9, [#allocation4], %s1616_s10, %s1616_s10, %s1617_s14  }
 0x566   :  { %1609 = dma.done.wait [#allocation4], 128  }
 0x567   :  { %1610 = vsyncadd [#allocation4], 4294967168 }
 0x568   :  { %1142 = vsyncpa [#allocation3], 1 }
 0x569   :  { %1143 = vsyncpa [#allocation6], 1 }
 0x56a   :  { %1144 = vsyncpa [#allocation9], 1 }
 0x56b   :  { %1145 = vsyncpa [#allocation4], 1 }

</bundles_post_ra>
